<compile_context>
chip_gen: v7x
topology: tpu7x:2x2x1
jax: 0.10.0
libtpu: 0.0.40
codegen_flags: <defaults>
</compile_context>

<pallas_src>
import jax
import jax.numpy as jnp
from jax.experimental import pallas as pl
from jax.experimental.pallas import tpu as pltpu

LANE = 128       # TPU lane width (last dim)
ROW_TILE = 16    # bf16 sublane packing: keep batch tiles a multiple of 16 rows


def _round_up(n, m):
    return ((n + m - 1) // m) * m


def _cdiv(a, b):
    return -(-a // b)


def _leaky_relu(v, slope=0.2):
    return jnp.where(v > 0, v, slope * v)


def mlp_kernel(x_ref,
               w1_ref, b1_ref,
               w2_ref, b2_ref,
               w3_ref, b3_ref,
               w4_ref, b4_ref,
               o_ref):
    # x arrives as f32 straight from HBM (no wrapper-side repack); the cast to bf16 is
    # free VPU filler in this HBM-bound kernel. MXU operands are bf16, accumulation is
    # f32 via preferred_element_type, bias add / LeakyReLU stay f32.
    x = x_ref[...].astype(jnp.bfloat16)

    h = jnp.dot(x, w1_ref[...], preferred_element_type=jnp.float32) + b1_ref[...]
    h = _leaky_relu(h)

    h = jnp.dot(h.astype(jnp.bfloat16), w2_ref[...],
                preferred_element_type=jnp.float32) + b2_ref[...]
    h = _leaky_relu(h)

    h = jnp.dot(h.astype(jnp.bfloat16), w3_ref[...],
                preferred_element_type=jnp.float32) + b3_ref[...]
    h = _leaky_relu(h)

    y = jnp.dot(h.astype(jnp.bfloat16), w4_ref[...],
                preferred_element_type=jnp.float32) + b4_ref[...]

    o_ref[...] = y.astype(o_ref.dtype)


def _tpu_generation():
    """Best-effort chip-generation probe. Returns is_v7x (2 TCs / 64 MiB VMEM)."""
    kind = ""
    try:
        kind = jax.devices()[0].device_kind.lower()
    except Exception:
        pass
    is_v7x = "v7" in kind
    try:
        vmem = int(pltpu.get_tpu_info().vmem_capacity_bytes)
        is_v7x = is_v7x or vmem <= (64 << 20)
    except Exception:
        pass
    return is_v7x


def mlp_forward(x, params, *, block_b=None, out_dtype=None):
    """x: (B, nin) float32. params: w1..w4 stored (in, out); b1..b4 stored (1, out).

    out_dtype defaults to x.dtype (f32, matching the PyTorch module). Passing
    jnp.bfloat16 halves the largest HBM stream if downstream tolerates it.
    """
    B, nin = x.shape
    nh = params["w1"].shape[1]
    nout = params["w4"].shape[1]
    if out_dtype is None:
        out_dtype = x.dtype

    # ---- pad hidden / output feature dims to the 128-lane width (zero pad -> exact) ---
    # The input feature dim (nin) is left untouched: a block last-dim equal to the full
    # array dim is legal, and this avoids materializing a padded copy of x in HBM.
    nh_p = _round_up(nh, LANE)
    nout_p = _round_up(nout, LANE)

    def pad_w(w, rows, cols):
        return jnp.pad(w, ((0, rows - w.shape[0]), (0, cols - w.shape[1]))).astype(jnp.bfloat16)

    def pad_b(b, cols):
        return jnp.pad(b, ((0, 0), (0, cols - b.shape[1]))).astype(jnp.float32)

    w1, b1 = pad_w(params["w1"], nin, nh_p), pad_b(params["b1"], nh_p)
    w2, b2 = pad_w(params["w2"], nh_p, nh_p), pad_b(params["b2"], nh_p)
    w3, b3 = pad_w(params["w3"], nh_p, nh_p), pad_b(params["b3"], nh_p)
    w4, b4 = pad_w(params["w4"], nh_p, nout_p), pad_b(params["b4"], nout_p)

    is_v7x = _tpu_generation()

    # ---- generation-aware VMEM budget (physical: 128 MiB v5e/v6e, 64 MiB v7x) --------
    if is_v7x:
        budget, vmem_limit = 44 << 20, 48 << 20
    else:
        budget, vmem_limit = 96 << 20, 100 << 20

    out_isz = jnp.dtype(out_dtype).itemsize

    def vmem_bytes(bb):
        # Weights/biases have constant index maps (fetched once); count 2 buffers each
        # to stay conservative about pipeline allocation.
        w_bytes = 2 * 2 * (nin * nh_p + 2 * nh_p * nh_p + nh_p * nout_p)   # bf16 weights
        bias_bytes = 2 * 4 * (3 * nh_p + nout_p)                           # f32 biases
        io_bytes = 2 * bb * (4 * nin + out_isz * nout_p)                   # 2x-buffered x + out
        act_bytes = 4 * bb * 3 * max(nh_p, nout_p)                         # f32/bf16 intermediates
        return w_bytes + bias_bytes + io_bytes + act_bytes

    if vmem_bytes(ROW_TILE) > budget:
        # TODO(synk): stream weights with pltpu.emit_pipeline / a 2-D grid over nh when
        # the all-weights-resident assumption breaks (hits first on v7x for nh_p >= ~2048).
        raise ValueError("hidden width too large for the all-weights-resident MLP kernel")

    # ---- batch tile: biggest 16-row multiple the VMEM budget allows (cap 4096) -------
    b16 = _round_up(B, ROW_TILE)
    if block_b is None:
        block_b = 4096
    block_b = min(_round_up(block_b, ROW_TILE), b16)
    while block_b > ROW_TILE and vmem_bytes(block_b) > budget:
        block_b -= ROW_TILE

    # v7x only (2 TensorCores): ensure >= 2 balanced grid steps, but never shrink tiles
    # below ~1024 rows to do so. v5e/v6e are single-TC and keep the single biggest tile.
    if is_v7x and b16 >= 2 * 1024:
        steps = _cdiv(b16, block_b)
        if steps == 1:
            block_b = max(1024, _round_up(_cdiv(b16, 2), ROW_TILE))
        elif steps % 2 == 1 and block_b > 1024:
            block_b = max(1024, _round_up(_cdiv(b16, steps + 1), ROW_TILE))

    B_pad = _round_up(B, block_b)
    x_in = x if B_pad == B else jnp.pad(x, ((0, B_pad - B), (0, 0)))

    grid = (B_pad // block_b,)

    def invariant_spec(shape):
        # Whole-array, grid-invariant operand: constant index map -> no re-fetch.
        return pl.BlockSpec(shape, lambda *_: (0,) * len(shape))

    in_specs = [
        pl.BlockSpec((block_b, nin), lambda i: (i, 0)),       # x: tiled over batch only
        invariant_spec(w1.shape), invariant_spec(b1.shape),
        invariant_spec(w2.shape), invariant_spec(b2.shape),
        invariant_spec(w3.shape), invariant_spec(b3.shape),
        invariant_spec(w4.shape), invariant_spec(b4.shape),
    ]
    out_spec = pl.BlockSpec((block_b, nout_p), lambda i: (i, 0))

    out_padded = pl.pallas_call(
        mlp_kernel,
        out_shape=jax.ShapeDtypeStruct((B_pad, nout_p), out_dtype),
        grid_spec=pltpu.PrefetchScalarGridSpec(
            num_scalar_prefetch=0,
            grid=grid,
            in_specs=in_specs,
            out_specs=out_spec,
        ),
        compiler_params=pltpu.CompilerParams(
            dimension_semantics=("parallel",),
            vmem_limit_bytes=int(vmem_limit),
        ),
    )(x_in, w1, b1, w2, b2, w3, b3, w4, b4)

    return out_padded[:B, :nout]


def init_mlp_params(key, nin, nout, nh, dtype=jnp.float32):
    """Mimics torch.nn.Linear default init: uniform(-1/sqrt(fan_in), 1/sqrt(fan_in))."""
    dims = [(nin, nh), (nh, nh), (nh, nh), (nh, nout)]
    params = {}
    for idx, (fan_in, fan_out) in enumerate(dims, start=1):
        key, kw, kb = jax.random.split(key, 3)
        bound = 1.0 / jnp.sqrt(fan_in)
        params[f"w{idx}"] = jax.random.uniform(
            kw, (fan_in, fan_out), dtype, minval=-bound, maxval=bound)
        params[f"b{idx}"] = jax.random.uniform(
            kb, (1, fan_out), dtype, minval=-bound, maxval=bound)
    return params


def mlp_reference(x, params):
    h = x
    for i in range(1, 4):
        h = h @ params[f"w{i}"] + params[f"b{i}"]
        h = jnp.where(h > 0, h, 0.2 * h)
    return h @ params["w4"] + params["b4"]


if __name__ == "__main__":
    key = jax.random.PRNGKey(0)
    B, nin, nh, nout = 32, 32, 64, 16

    key, kx = jax.random.split(key)
    x = jax.random.normal(kx, (B, nin), jnp.float32)
    params = init_mlp_params(key, nin, nout, nh)

    out = mlp_forward(x, params)
    out = jax.block_until_ready(out)

    ref = mlp_reference(x, params)  # f32 reference
    assert out.shape == (B, nout)
    # bf16 MXU operands -> looser tolerance vs the pure-f32 reference
    assert jnp.allclose(out.astype(jnp.float32), ref, atol=5e-2, rtol=5e-2), \
        "mismatch vs reference"

    print("KERNEL_OK")
</pallas_src>

<mosaic_0001>
module attributes {stable_mosaic.version = 11 : i64} {
  func.func @mlp_kernel(%arg0: i32, %arg1: memref<32x32xf32, #tpu.memory_space<vmem>>, %arg2: memref<32x128xbf16, #tpu.memory_space<vmem>>, %arg3: memref<1x128xf32, #tpu.memory_space<vmem>>, %arg4: memref<128x128xbf16, #tpu.memory_space<vmem>>, %arg5: memref<1x128xf32, #tpu.memory_space<vmem>>, %arg6: memref<128x128xbf16, #tpu.memory_space<vmem>>, %arg7: memref<1x128xf32, #tpu.memory_space<vmem>>, %arg8: memref<128x128xbf16, #tpu.memory_space<vmem>>, %arg9: memref<1x128xf32, #tpu.memory_space<vmem>>, %arg10: memref<32x128xf32, #tpu.memory_space<vmem>>) attributes {dimension_semantics = [#tpu.dimension_semantics<parallel>], iteration_bounds = array<i64: 1>, scalar_prefetch = 0 : i64, scratch_operands = 0 : i64, tpu.core_type = #tpu.core_type<tc>, window_params = [{transform_indices = @transform_0, window_bounds = array<i64: 32, 32>}, {pipeline_mode = #tpu.pipeline_mode<synchronous>, transform_indices = @transform_1, window_bounds = array<i64: 32, 128>}, {pipeline_mode = #tpu.pipeline_mode<synchronous>, transform_indices = @transform_2, window_bounds = array<i64: 1, 128>}, {pipeline_mode = #tpu.pipeline_mode<synchronous>, transform_indices = @transform_3, window_bounds = array<i64: 128, 128>}, {pipeline_mode = #tpu.pipeline_mode<synchronous>, transform_indices = @transform_4, window_bounds = array<i64: 1, 128>}, {pipeline_mode = #tpu.pipeline_mode<synchronous>, transform_indices = @transform_5, window_bounds = array<i64: 128, 128>}, {pipeline_mode = #tpu.pipeline_mode<synchronous>, transform_indices = @transform_6, window_bounds = array<i64: 1, 128>}, {pipeline_mode = #tpu.pipeline_mode<synchronous>, transform_indices = @transform_7, window_bounds = array<i64: 128, 128>}, {pipeline_mode = #tpu.pipeline_mode<synchronous>, transform_indices = @transform_8, window_bounds = array<i64: 1, 128>}, {transform_indices = @transform_9, window_bounds = array<i64: 32, 128>}]} {
    %c0 = arith.constant 0 : index
    %c0_0 = arith.constant 0 : index
    %0 = vector.load %arg1[%c0, %c0_0] : memref<32x32xf32, #tpu.memory_space<vmem>>, vector<32x32xf32>
    %1 = arith.truncf %0 : vector<32x32xf32> to vector<32x32xbf16>
    %c0_1 = arith.constant 0 : index
    %c0_2 = arith.constant 0 : index
    %2 = vector.load %arg2[%c0_1, %c0_2] : memref<32x128xbf16, #tpu.memory_space<vmem>>, vector<32x128xbf16>
    %cst = arith.constant dense<0.000000e+00> : vector<32x128xf32>
    %3 = tpu.matmul %1, %2, %cst {dimension_numbers = #tpu.dot_dimension_numbers<[1], [0], [0], [1], [0, 0, 1, 1], [], []>} : vector<32x32xbf16>, vector<32x128xbf16>, vector<32x128xf32> -> vector<32x128xf32>
    %c0_3 = arith.constant 0 : index
    %c0_4 = arith.constant 0 : index
    %4 = vector.load %arg3[%c0_3, %c0_4] : memref<1x128xf32, #tpu.memory_space<vmem>>, vector<1x128xf32>
    %5 = vector.broadcast %4 : vector<1x128xf32> to vector<32x128xf32>
    %6 = arith.addf %3, %5 : vector<32x128xf32>
    %cst_5 = arith.constant 0.000000e+00 : f32
    %7 = vector.broadcast %cst_5 : f32 to vector<32x128xf32>
    %8 = arith.cmpf ogt, %6, %7 : vector<32x128xf32>
    %cst_6 = arith.constant 2.000000e-01 : f32
    %9 = vector.broadcast %cst_6 : f32 to vector<32x128xf32>
    %10 = arith.mulf %9, %6 : vector<32x128xf32>
    %11 = arith.select %8, %6, %10 : vector<32x128xi1>, vector<32x128xf32>
    %12 = arith.truncf %11 : vector<32x128xf32> to vector<32x128xbf16>
    %c0_7 = arith.constant 0 : index
    %c0_8 = arith.constant 0 : index
    %13 = vector.load %arg4[%c0_7, %c0_8] : memref<128x128xbf16, #tpu.memory_space<vmem>>, vector<128x128xbf16>
    %cst_9 = arith.constant dense<0.000000e+00> : vector<32x128xf32>
    %14 = tpu.matmul %12, %13, %cst_9 {dimension_numbers = #tpu.dot_dimension_numbers<[1], [0], [0], [1], [0, 0, 1, 1], [], []>} : vector<32x128xbf16>, vector<128x128xbf16>, vector<32x128xf32> -> vector<32x128xf32>
    %c0_10 = arith.constant 0 : index
    %c0_11 = arith.constant 0 : index
    %15 = vector.load %arg5[%c0_10, %c0_11] : memref<1x128xf32, #tpu.memory_space<vmem>>, vector<1x128xf32>
    %16 = vector.broadcast %15 : vector<1x128xf32> to vector<32x128xf32>
    %17 = arith.addf %14, %16 : vector<32x128xf32>
    %cst_12 = arith.constant 0.000000e+00 : f32
    %18 = vector.broadcast %cst_12 : f32 to vector<32x128xf32>
    %19 = arith.cmpf ogt, %17, %18 : vector<32x128xf32>
    %cst_13 = arith.constant 2.000000e-01 : f32
    %20 = vector.broadcast %cst_13 : f32 to vector<32x128xf32>
    %21 = arith.mulf %20, %17 : vector<32x128xf32>
    %22 = arith.select %19, %17, %21 : vector<32x128xi1>, vector<32x128xf32>
    %23 = arith.truncf %22 : vector<32x128xf32> to vector<32x128xbf16>
    %c0_14 = arith.constant 0 : index
    %c0_15 = arith.constant 0 : index
    %24 = vector.load %arg6[%c0_14, %c0_15] : memref<128x128xbf16, #tpu.memory_space<vmem>>, vector<128x128xbf16>
    %cst_16 = arith.constant dense<0.000000e+00> : vector<32x128xf32>
    %25 = tpu.matmul %23, %24, %cst_16 {dimension_numbers = #tpu.dot_dimension_numbers<[1], [0], [0], [1], [0, 0, 1, 1], [], []>} : vector<32x128xbf16>, vector<128x128xbf16>, vector<32x128xf32> -> vector<32x128xf32>
    %c0_17 = arith.constant 0 : index
    %c0_18 = arith.constant 0 : index
    %26 = vector.load %arg7[%c0_17, %c0_18] : memref<1x128xf32, #tpu.memory_space<vmem>>, vector<1x128xf32>
    %27 = vector.broadcast %26 : vector<1x128xf32> to vector<32x128xf32>
    %28 = arith.addf %25, %27 : vector<32x128xf32>
    %cst_19 = arith.constant 0.000000e+00 : f32
    %29 = vector.broadcast %cst_19 : f32 to vector<32x128xf32>
    %30 = arith.cmpf ogt, %28, %29 : vector<32x128xf32>
    %cst_20 = arith.constant 2.000000e-01 : f32
    %31 = vector.broadcast %cst_20 : f32 to vector<32x128xf32>
    %32 = arith.mulf %31, %28 : vector<32x128xf32>
    %33 = arith.select %30, %28, %32 : vector<32x128xi1>, vector<32x128xf32>
    %34 = arith.truncf %33 : vector<32x128xf32> to vector<32x128xbf16>
    %c0_21 = arith.constant 0 : index
    %c0_22 = arith.constant 0 : index
    %35 = vector.load %arg8[%c0_21, %c0_22] : memref<128x128xbf16, #tpu.memory_space<vmem>>, vector<128x128xbf16>
    %cst_23 = arith.constant dense<0.000000e+00> : vector<32x128xf32>
    %36 = tpu.matmul %34, %35, %cst_23 {dimension_numbers = #tpu.dot_dimension_numbers<[1], [0], [0], [1], [0, 0, 1, 1], [], []>} : vector<32x128xbf16>, vector<128x128xbf16>, vector<32x128xf32> -> vector<32x128xf32>
    %c0_24 = arith.constant 0 : index
    %c0_25 = arith.constant 0 : index
    %37 = vector.load %arg9[%c0_24, %c0_25] : memref<1x128xf32, #tpu.memory_space<vmem>>, vector<1x128xf32>
    %38 = vector.broadcast %37 : vector<1x128xf32> to vector<32x128xf32>
    %39 = arith.addf %36, %38 : vector<32x128xf32>
    %c0_26 = arith.constant 0 : index
    %c0_27 = arith.constant 0 : index
    %40 = vector.load %arg10[%c0_26, %c0_27] : memref<32x128xf32, #tpu.memory_space<vmem>>, vector<32x128xf32>
    tpu.vector_store %arg10[%c0_26, %c0_27], %39 {strides = array<i32>} : memref<32x128xf32, #tpu.memory_space<vmem>>, vector<32x128xf32>,
    return
  }
  func.func @transform_0(%arg0: i32) -> (i32, i32) {
    %c0_i32 = arith.constant 0 : i32
    %c0_i32_0 = arith.constant 0 : i32
    return %arg0, %c0_i32 : i32, i32
  }
  func.func @transform_1(%arg0: i32) -> (i32, i32) {
    %c0_i32 = arith.constant 0 : i32
    %c0_i32_0 = arith.constant 0 : i32
    %c0_i32_1 = arith.constant 0 : i32
    return %c0_i32, %c0_i32_0 : i32, i32
  }
  func.func @transform_2(%arg0: i32) -> (i32, i32) {
    %c0_i32 = arith.constant 0 : i32
    %c0_i32_0 = arith.constant 0 : i32
    %c0_i32_1 = arith.constant 0 : i32
    return %c0_i32, %c0_i32_0 : i32, i32
  }
  func.func @transform_3(%arg0: i32) -> (i32, i32) {
    %c0_i32 = arith.constant 0 : i32
    %c0_i32_0 = arith.constant 0 : i32
    %c0_i32_1 = arith.constant 0 : i32
    return %c0_i32, %c0_i32_0 : i32, i32
  }
  func.func @transform_4(%arg0: i32) -> (i32, i32) {
    %c0_i32 = arith.constant 0 : i32
    %c0_i32_0 = arith.constant 0 : i32
    %c0_i32_1 = arith.constant 0 : i32
    return %c0_i32, %c0_i32_0 : i32, i32
  }
  func.func @transform_5(%arg0: i32) -> (i32, i32) {
    %c0_i32 = arith.constant 0 : i32
    %c0_i32_0 = arith.constant 0 : i32
    %c0_i32_1 = arith.constant 0 : i32
    return %c0_i32, %c0_i32_0 : i32, i32
  }
  func.func @transform_6(%arg0: i32) -> (i32, i32) {
    %c0_i32 = arith.constant 0 : i32
    %c0_i32_0 = arith.constant 0 : i32
    %c0_i32_1 = arith.constant 0 : i32
    return %c0_i32, %c0_i32_0 : i32, i32
  }
  func.func @transform_7(%arg0: i32) -> (i32, i32) {
    %c0_i32 = arith.constant 0 : i32
    %c0_i32_0 = arith.constant 0 : i32
    %c0_i32_1 = arith.constant 0 : i32
    return %c0_i32, %c0_i32_0 : i32, i32
  }
  func.func @transform_8(%arg0: i32) -> (i32, i32) {
    %c0_i32 = arith.constant 0 : i32
    %c0_i32_0 = arith.constant 0 : i32
    %c0_i32_1 = arith.constant 0 : i32
    return %c0_i32, %c0_i32_0 : i32, i32
  }
  func.func @transform_9(%arg0: i32) -> (i32, i32) {
    %c0_i32 = arith.constant 0 : i32
    %c0_i32_0 = arith.constant 0 : i32
    return %arg0, %c0_i32 : i32, i32
  }
}

</mosaic_0001>

<bundles_post_ra>
// kernel: tpu_custom_call.1
= control target key start
LH: loop header
LB: loop body
LE: loop exit
PB: predicated region body
PF: predicated region fallthrough
CT: control target
= control target key end

     0   :  { %14 = vsyncpa [#allocation3], 0  ;;  %s1268_s0 = inlined_call_operand.hbm [shape: f32[32,32], index: 0, kind: input, shape index: {}]   ;;  %s1269_s1 = inlined_call_operand.hbm [shape: bf16[32,128], index: 1, kind: input, shape index: {}]   ;;  %s1270_s2 = inlined_call_operand.hbm [shape: f32[1,128], index: 2, kind: input, shape index: {}]   ;;  %s1271_s3 = inlined_call_operand.hbm [shape: bf16[128,128], index: 3, kind: input, shape index: {}]   ;;  %s1272_s4 = inlined_call_operand.hbm [shape: f32[1,128], index: 4, kind: input, shape index: {}]   ;;  %s1273_s5 = inlined_call_operand.hbm [shape: bf16[128,128], index: 5, kind: input, shape index: {}]   ;;  %s1274_s6 = inlined_call_operand.hbm [shape: f32[1,128], index: 6, kind: input, shape index: {}]   ;;  %s1275_s7 = inlined_call_operand.hbm [shape: bf16[128,128], index: 7, kind: input, shape index: {}]   ;;  %s1276_s8 = inlined_call_operand.hbm [shape: f32[1,128], index: 8, kind: input, shape index: {}]   ;;  %s1277_s9 = inlined_call_operand.hbm [shape: f32[32,128], index: 9, kind: output, shape index: {}]  }
   0x1   :  { %15 = vsyncpa [#allocation6], 0 }
   0x2   :  { %16 = vsyncpa [#allocation9], 0 }
   0x3   :  { %17 = vsyncpa [#allocation12], 0 }
   0x4   :  { %18 = vsyncpa [#allocation15], 0 }
   0x5   :  { %19 = vsyncpa [#allocation4], 0  ;;  %s1066_s30 = smov [#allocation5]   ;;  %s834_s13 = scalar_lea.hbm %s1269_s1, 256 }
   0x6   :  { %s37_s10 = sshll.u32 %s1066_s30, 4  ;;  %p835_p0 = scmp.ne.s32.totalorder %s1269_s1, %s834_s13  ;;  %s38_s10 = int_to_ptr.vmem [resolvable:$true] %s37_s10 }
   0x7   :  { %p838_p1 = scmp.lt.u32.totalorder %s834_s13, %s1269_s1 }
   0x9   :  { %p840_p2 = pnand %p838_p1, %p835_p0 }
   0xb   :  { %843 = shalt.err (!%p840_p2)
}
   0xc   :  { %s844_s18 = scalar_lea.vmem %s38_s10, 256  ;;  %p849_p4 = scmp.lt.s32.totalorder %s38_s10, %s38_s10 }
   0xd   :  { %p845_p3 = scmp.ne.s32.totalorder %s38_s10, %s844_s18  ;;  %p850_p5 = scmp.lt.s32.totalorder %s844_s18, %s844_s18 }
   0xf   :  { %p851_p6 = por %p850_p5, %p849_p4 }
  0x11   :  { %p852_p7 = pnand %p851_p6, %p845_p3 }
  0x13   :  { %855 = shalt.err (!%p852_p7)
}
  0x14   :  { %s1067_s19 = smov 64   ;;  %s1068_s20 = smov 4  }
  0x15   :  { %43 = dma.hbm_to_vmem [thread:$0]  %s1269_s1, 256, %s38_s10, [#allocation6], %s1067_s19, %s1067_s19, %s1068_s20  }
  0x16   :  { %s1069_s23 = smov [#allocation8]   ;;  %s1070_s25 = smov [#allocation11]  }
  0x17   :  { %s59_s24 = sshll.u32 %s1069_s23, 4  ;;  %s81_s26 = sshll.u32 %s1070_s25, 4  ;;  %s60_s24 = int_to_ptr.vmem [resolvable:$true] %s59_s24  ;;  %s82_s26 = int_to_ptr.vmem [resolvable:$true] %s81_s26 }
  0x18   :  { %s856_s29 = scalar_lea.hbm %s1271_s3, 1024 }
  0x19   :  { %p857_p8 = scmp.ne.s32.totalorder %s1271_s3, %s856_s29  ;;  %p860_p9 = scmp.lt.u32.totalorder %s856_s29, %s1271_s3 }
  0x1b   :  { %p862_p10 = pnand %p860_p9, %p857_p8 }
  0x1d   :  { %865 = shalt.err (!%p862_p10)
}
  0x1e   :  { %s866_s1 = scalar_lea.vmem %s60_s24, 1024  ;;  %p871_p12 = scmp.lt.s32.totalorder %s60_s24, %s60_s24 }
  0x1f   :  { %p867_p11 = scmp.ne.s32.totalorder %s60_s24, %s866_s1  ;;  %p872_p13 = scmp.lt.s32.totalorder %s866_s1, %s866_s1 }
  0x21   :  { %p873_p0 = por %p872_p13, %p871_p12 }
  0x23   :  { %p874_p1 = pnand %p873_p0, %p867_p11 }
  0x25   :  { %877 = shalt.err (!%p874_p1)
}
  0x26   :  { %65 = dma.hbm_to_vmem [thread:$0]  %s1271_s3, 1024, %s60_s24, [#allocation9], %s1067_s19, %s1067_s19, %s1068_s20  }
  0x27   :  { %s878_s17 = scalar_lea.hbm %s1273_s5, 1024 }
  0x28   :  { %p879_p2 = scmp.ne.s32.totalorder %s1273_s5, %s878_s17  ;;  %p882_p3 = scmp.lt.u32.totalorder %s878_s17, %s1273_s5 }
  0x2a   :  { %p884_p4 = pnand %p882_p3, %p879_p2 }
  0x2c   :  { %887 = shalt.err (!%p884_p4)
}
  0x2d   :  { %s888_s25 = scalar_lea.vmem %s82_s26, 1024  ;;  %p893_p6 = scmp.lt.s32.totalorder %s82_s26, %s82_s26 }
  0x2e   :  { %p889_p5 = scmp.ne.s32.totalorder %s82_s26, %s888_s25  ;;  %p894_p7 = scmp.lt.s32.totalorder %s888_s25, %s888_s25 }
  0x30   :  { %p895_p8 = por %p894_p7, %p893_p6 }
  0x32   :  { %p896_p9 = pnand %p895_p8, %p889_p5 }
  0x34   :  { %899 = shalt.err (!%p896_p9)
}
  0x35   :  { %87 = dma.hbm_to_vmem [thread:$0]  %s1273_s5, 1024, %s82_s26, [#allocation12], %s1067_s19, %s1067_s19, %s1068_s20  }
  0x36   :  { %s1071_s27 = smov [#allocation14]   ;;  %s1072_s29 = smov [#allocation2]  }
  0x37   :  { %s103_s28 = sshll.u32 %s1071_s27, 4  ;;  %s25_s30 = sshll.u32 %s1072_s29, 4  ;;  %s104_s28 = int_to_ptr.vmem [resolvable:$true] %s103_s28  ;;  %s26_s30 = int_to_ptr.vmem [resolvable:$true] %s25_s30 }
  0x38   :  { %s900_s13 = scalar_lea.hbm %s1275_s7, 1024 }
  0x39   :  { %p901_p10 = scmp.ne.s32.totalorder %s1275_s7, %s900_s13  ;;  %p904_p11 = scmp.lt.u32.totalorder %s900_s13, %s1275_s7 }
  0x3b   :  { %p906_p12 = pnand %p904_p11, %p901_p10 }
  0x3d   :  { %909 = shalt.err (!%p906_p12)
}
  0x3e   :  { %s910_s5 = scalar_lea.vmem %s104_s28, 1024  ;;  %p915_p0 = scmp.lt.s32.totalorder %s104_s28, %s104_s28 }
  0x3f   :  { %p911_p13 = scmp.ne.s32.totalorder %s104_s28, %s910_s5  ;;  %p916_p1 = scmp.lt.s32.totalorder %s910_s5, %s910_s5 }
  0x41   :  { %p917_p2 = por %p916_p1, %p915_p0 }
  0x43   :  { %p918_p3 = pnand %p917_p2, %p911_p13 }
  0x45   :  { %921 = shalt.err (!%p918_p3)
}
  0x46   :  { %109 = dma.hbm_to_vmem [thread:$0]  %s1275_s7, 1024, %s104_s28, [#allocation15], %s1067_s19, %s1067_s19, %s1068_s20  }
  0x47   :  { %s922_s21 = scalar_lea.hbm %s1268_s0, 512 }
  0x48   :  { %p923_p4 = scmp.ne.s32.totalorder %s1268_s0, %s922_s21  ;;  %p926_p5 = scmp.lt.u32.totalorder %s922_s21, %s1268_s0 }
  0x4a   :  { %p928_p6 = pnand %p926_p5, %p923_p4 }
  0x4c   :  { %931 = shalt.err (!%p928_p6)
}
  0x4d   :  { %s932_s24 = scalar_lea.vmem %s26_s30, 512  ;;  %p937_p8 = scmp.lt.s32.totalorder %s26_s30, %s26_s30 }
  0x4e   :  { %p933_p7 = scmp.ne.s32.totalorder %s26_s30, %s932_s24  ;;  %p938_p9 = scmp.lt.s32.totalorder %s932_s24, %s932_s24 }
  0x50   :  { %p939_p10 = por %p938_p9, %p937_p8 }
  0x52   :  { %p940_p11 = pnand %p939_p10, %p933_p7 }
  0x54   :  { %943 = shalt.err (!%p940_p11)
}
  0x55   :  { %s1073_s7 = smov 128   ;;  %s1074_s19 = smov 8  }
  0x56   :  { %31 = dma.hbm_to_vmem [thread:$0]  %s1268_s0, 512, %s26_s30, [#allocation3], %s1073_s7, %s1073_s7, %s1074_s19  }
  0x57   :  { %s1075_s28 = smov [#allocation7]   ;;  %s1076_s11 = smov [#allocation10]  }
  0x58   :  { %s50_s29 = sshll.u32 %s1075_s28, 4  ;;  %s72_s12 = sshll.u32 %s1076_s11, 4  ;;  %s51_s29 = int_to_ptr.vmem [resolvable:$true] %s50_s29  ;;  %s73_s12 = int_to_ptr.vmem [resolvable:$true] %s72_s12 }
  0x59   :  { %s944_s10 = scalar_lea.hbm %s1270_s2, 16 }
  0x5a   :  { %p945_p12 = scmp.ne.s32.totalorder %s1270_s2, %s944_s10  ;;  %p948_p13 = scmp.lt.u32.totalorder %s944_s10, %s1270_s2 }
  0x5c   :  { %p950_p0 = pnand %p948_p13, %p945_p12 }
  0x5e   :  { %953 = shalt.err (!%p950_p0)
}
  0x5f   :  { %s954_s0 = scalar_lea.vmem %s51_s29, 16  ;;  %s958_s30 = scalar_lea.vmem %s51_s29, 32 }
  0x60   :  { %p955_p1 = scmp.ne.s32.totalorder %s51_s29, %s954_s0  ;;  %p959_p2 = scmp.lt.s32.totalorder %s51_s29, %s51_s29 }
  0x61   :  { %p960_p3 = scmp.lt.s32.totalorder %s958_s30, %s954_s0 }
  0x63   :  { %p961_p4 = por %p960_p3, %p959_p2 }
  0x65   :  { %p962_p5 = pnand %p961_p4, %p955_p1 }
  0x67   :  { %965 = shalt.err (!%p962_p5)
}
  0x68   :  { %53 = dma.hbm_to_vmem [thread:$0]  %s1270_s2, 16, %s51_s29, [#allocation6]  }
  0x69   :  { %s966_s22 = scalar_lea.hbm %s1272_s4, 16 }
  0x6a   :  { %p967_p6 = scmp.ne.s32.totalorder %s1272_s4, %s966_s22  ;;  %p970_p7 = scmp.lt.u32.totalorder %s966_s22, %s1272_s4 }
  0x6c   :  { %p972_p8 = pnand %p970_p7, %p967_p6 }
  0x6e   :  { %975 = shalt.err (!%p972_p8)
}
  0x6f   :  { %s976_s20 = scalar_lea.vmem %s73_s12, 16  ;;  %s980_s27 = scalar_lea.vmem %s73_s12, 32 }
  0x70   :  { %p977_p9 = scmp.ne.s32.totalorder %s73_s12, %s976_s20  ;;  %p981_p10 = scmp.lt.s32.totalorder %s73_s12, %s73_s12 }
  0x71   :  { %p982_p11 = scmp.lt.s32.totalorder %s980_s27, %s976_s20 }
  0x73   :  { %p983_p12 = por %p982_p11, %p981_p10 }
  0x75   :  { %p984_p13 = pnand %p983_p12, %p977_p9 }
  0x77   :  { %987 = shalt.err (!%p984_p13)
}
  0x78   :  { %75 = dma.hbm_to_vmem [thread:$0]  %s1272_s4, 16, %s73_s12, [#allocation9]  }
  0x79   :  { %s1077_s29 = smov [#allocation13]   ;;  %s1078_s13 = smov [#allocation16]  }
  0x7a   :  { %s94_s11 = sshll.u32 %s1077_s29, 4  ;;  %s116_s1 = sshll.u32 %s1078_s13, 4  ;;  %s95_s11 = int_to_ptr.vmem [resolvable:$true] %s94_s11  ;;  %s117_s1 = int_to_ptr.vmem [resolvable:$true] %s116_s1 }
  0x7b   :  { %s988_s15 = scalar_lea.hbm %s1274_s6, 16 }
  0x7c   :  { %p989_p0 = scmp.ne.s32.totalorder %s1274_s6, %s988_s15  ;;  %p992_p1 = scmp.lt.u32.totalorder %s988_s15, %s1274_s6 }
  0x7e   :  { %p994_p2 = pnand %p992_p1, %p989_p0 }
  0x80   :  { %997 = shalt.err (!%p994_p2)
}
  0x81   :  { %s998_s4 = scalar_lea.vmem %s95_s11, 16  ;;  %s1002_s12 = scalar_lea.vmem %s95_s11, 32 }
  0x82   :  { %p999_p3 = scmp.ne.s32.totalorder %s95_s11, %s998_s4  ;;  %p1003_p4 = scmp.lt.s32.totalorder %s95_s11, %s95_s11 }
  0x83   :  { %p1004_p5 = scmp.lt.s32.totalorder %s1002_s12, %s998_s4 }
  0x85   :  { %p1005_p6 = por %p1004_p5, %p1003_p4 }
  0x87   :  { %p1006_p7 = pnand %p1005_p6, %p999_p3 }
  0x89   :  { %1009 = shalt.err (!%p1006_p7)
}
  0x8a   :  { %97 = dma.hbm_to_vmem [thread:$0]  %s1274_s6, 16, %s95_s11, [#allocation12]  }
  0x8b   :  { %s1010_s22 = scalar_lea.hbm %s1276_s8, 16 }
  0x8c   :  { %p1011_p8 = scmp.ne.s32.totalorder %s1276_s8, %s1010_s22  ;;  %p1014_p9 = scmp.lt.u32.totalorder %s1010_s22, %s1276_s8 }
  0x8e   :  { %p1016_p10 = pnand %p1014_p9, %p1011_p8 }
  0x90   :  { %1019 = shalt.err (!%p1016_p10)
}
  0x91   :  { %s1020_s20 = scalar_lea.vmem %s117_s1, 16  ;;  %s1024_s27 = scalar_lea.vmem %s117_s1, 32 }
  0x92   :  { %p1021_p11 = scmp.ne.s32.totalorder %s117_s1, %s1020_s20  ;;  %p1025_p12 = scmp.lt.s32.totalorder %s117_s1, %s117_s1 }
  0x93   :  { %p1026_p13 = scmp.lt.s32.totalorder %s1024_s27, %s1020_s20 }
  0x95   :  { %p1027_p0 = por %p1026_p13, %p1025_p12 }
  0x97   :  { %p1028_p1 = pnand %p1027_p0, %p1021_p11 }
  0x99   :  { %1031 = shalt.err (!%p1028_p1)
}
  0x9a   :  { %119 = dma.hbm_to_vmem [thread:$0]  %s1276_s8, 16, %s117_s1, [#allocation15]  }
  0x9b   :  { %1054 = dma.done.wait [#allocation3], 512  }
  0x9c   :  { %1055 = vsyncadd [#allocation3], 4294966784 }
  0x9d   :  { %1056 = dma.done.wait [#allocation6], 272  }
  0x9e   :  { %1057 = vsyncadd [#allocation6], 4294967024 }
  0x9f   :  { %1058 = dma.done.wait [#allocation9], 1040  }
  0xa0   :  { %1059 = vsyncadd [#allocation9], 4294966256 }
  0xa1   :  { %1060 = dma.done.wait [#allocation12], 1040  }
  0xa2   :  { %1061 = vsyncadd [#allocation12], 4294966256 }
  0xa3   :  { %1062 = dma.done.wait [#allocation15], 1040  }
  0xa4   :  { %1063 = vsyncadd [#allocation15], 4294966256  ;;  %v808_v0 = vld [vmem:[#allocation5] sm:$0xff]   ;;  %v809_v1 = vld [vmem:[#allocation5 + $0x8] sm:$0xff]   ;;  %vm177_vm0 = vcmask 261120   ;;  %s1079_s8 = smov [#allocation17]  }
  0xa5   :  { %726 = vmatprep.subr.bf16.mxu0 %v808_v0  ;;  %v148_v2 = vld [vmem:[#allocation2] sm:$0xff]  ;;  %v149_v3 = vld [vmem:[#allocation2 + $0x8] sm:$0xff]  ;;  %v150_v4 = vld [vmem:[#allocation2 + $0x10] sm:$0xff]  ;;  %s644_s28 = sshll.u32 %s1079_s8, 4  ;;  %s645_s28 = int_to_ptr.vmem [resolvable:$true] %s644_s28 }
  0xa6   :  { %727 = vmatpush3.bf16.msra.mxu0 %v808_v0  ;;  %v152_v5 = vpack.c.bf16 %v149_v3, %v148_v2  ;;  %v151_v6 = vld [vmem:[#allocation2 + $0x18] sm:$0xff]  ;;  %v812_v10 = vld [vmem:[#allocation8 + $0x10] sm:$0xff]   ;;  %v813_v11 = vld [vmem:[#allocation8 + $0x18] sm:$0xff]   ;;  %s1032_s29 = scalar_lea.vmem %s645_s28, 512  ;;  %p1037_p3 = scmp.lt.s32.totalorder %s645_s28, %s645_s28 }
  0xa7   :  { %728 = vmatprep.subr.bf16.mxu0 %v809_v1  ;;  %v810_v7 = vld [vmem:[#allocation8] sm:$0xff]   ;;  %v811_v8 = vld [vmem:[#allocation8 + $0x8] sm:$0xff]   ;;  %v153_v9 = vpack.c.bf16 %v151_v6, %v150_v4  ;;  %v816_v14 = vld [vmem:[#allocation8 + $0x30] sm:$0xff]   ;;  %p1033_p2 = scmp.ne.s32.totalorder %s645_s28, %s1032_s29  ;;  %p1038_p4 = scmp.lt.s32.totalorder %s1032_s29, %s1032_s29 }
  0xa8   :  { %730 = vmatprep.mubr.msk.bf16.mxu0 %vm177_vm0, %v152_v5  ;;  %734 = vmatprep.subr.bf16.mxu1 %v810_v7  ;;  %v814_v12 = vld [vmem:[#allocation8 + $0x20] sm:$0xff]   ;;  %v815_v13 = vld [vmem:[#allocation8 + $0x28] sm:$0xff]   ;;  %v817_v15 = vld [vmem:[#allocation8 + $0x38] sm:$0xff]  }
  0xa9   :  { %735 = vmatpush3.bf16.msra.mxu1 %v810_v7  ;;  %v818_v16 = vld [vmem:[#allocation11] sm:$0xff]   ;;  %v819_v17 = vld [vmem:[#allocation11 + $0x8] sm:$0xff]   ;;  %v820_v18 = vld [vmem:[#allocation11 + $0x10] sm:$0xff]   ;;  %p1039_p5 = por %p1038_p4, %p1037_p3 }
  0xaa   :  { %729 = vmatpush3.bf16.msra.mxu0 %v809_v1  ;;  %736 = vmatprep.subr.bf16.mxu1 %v811_v8  ;;  %v821_v19 = vld [vmem:[#allocation11 + $0x18] sm:$0xff]   ;;  %v822_v20 = vld [vmem:[#allocation11 + $0x20] sm:$0xff]   ;;  %v823_v40 = vld [vmem:[#allocation11 + $0x28] sm:$0xff]  }
  0xab   :  { %754 = vmatprep.subr.bf16.mxu0 %v818_v16  ;;  %v660_v21 = vld [vmem:[#allocation7] ss:$0 sm:$0xff]  ;;  %v824_v41 = vld [vmem:[#allocation11 + $0x30] sm:$0xff]   ;;  %v826_v43 = vld [vmem:[#allocation14] sm:$0xff]   ;;  %p1040_p6 = pnand %p1039_p5, %p1033_p2 }
  0xac   :  { %v825_v42 = vld [vmem:[#allocation11 + $0x38] sm:$0xff]   ;;  %v827_v44 = vld [vmem:[#allocation14 + $0x8] sm:$0xff]   ;;  %v830_v47 = vld [vmem:[#allocation14 + $0x20] sm:$0xff]  }
  0xad   :  { %731 = vmatmul.mubr.msk.bf16.vlgmr.msra.gmra.mrb[0].mxu0 %vm177_vm0, %v153_v9  ;;  %737 = vmatpush3.bf16.msra.mxu1 %v811_v8  ;;  %v828_v45 = vld [vmem:[#allocation14 + $0x10] sm:$0xff]   ;;  %v829_v46 = vld [vmem:[#allocation14 + $0x18] sm:$0xff]   ;;  %v831_v3 = vld [vmem:[#allocation14 + $0x28] sm:$0xff]  }
  0xae   :  { %738 = vmatprep.subr.bf16.mxu1 %v812_v10  ;;  %755 = vmatpush3.bf16.msra.mxu0 %v818_v16  ;;  %v665_v48 = vld [vmem:[#allocation10] ss:$0 sm:$0xff]  ;;  %v832_v4 = vld [vmem:[#allocation14 + $0x30] sm:$0xff]   ;;  %v674_v6 = vld [vmem:[#allocation13] ss:$0 sm:$0xff] }
  0xaf   :  { %756 = vmatprep.subr.bf16.mxu0 %v819_v17  ;;  %v833_v5 = vld [vmem:[#allocation14 + $0x38] sm:$0xff]  }
  0xb1   :  { %739 = vmatpush3.bf16.msra.mxu1 %v812_v10 }
  0xb2   :  { %740 = vmatprep.subr.bf16.mxu1 %v813_v11  ;;  %757 = vmatpush3.bf16.msra.mxu0 %v819_v17 }
  0xb3   :  { %758 = vmatprep.subr.bf16.mxu0 %v820_v18 }
  0xb5   :  { %741 = vmatpush3.bf16.msra.mxu1 %v813_v11 }
  0xb6   :  { %742 = vmatprep.subr.bf16.mxu1 %v814_v12  ;;  %759 = vmatpush3.bf16.msra.mxu0 %v820_v18 }
  0xb7   :  { %760 = vmatprep.subr.bf16.mxu0 %v821_v19 }
  0xb9   :  { %743 = vmatpush3.bf16.msra.mxu1 %v814_v12 }
  0xba   :  { %744 = vmatprep.subr.bf16.mxu1 %v815_v13  ;;  %761 = vmatpush3.bf16.msra.mxu0 %v821_v19 }
  0xbb   :  { %762 = vmatprep.subr.bf16.mxu0 %v822_v20 }
  0xbd   :  { %745 = vmatpush3.bf16.msra.mxu1 %v815_v13 }
  0xbe   :  { %746 = vmatprep.subr.bf16.mxu1 %v816_v14  ;;  %763 = vmatpush3.bf16.msra.mxu0 %v822_v20 }
  0xbf   :  { %764 = vmatprep.subr.bf16.mxu0 %v823_v40 }
  0xc1   :  { %747 = vmatpush3.bf16.msra.mxu1 %v816_v14 }
  0xc2   :  { %748 = vmatprep.subr.bf16.mxu1 %v817_v15  ;;  %765 = vmatpush3.bf16.msra.mxu0 %v823_v40 }
  0xc3   :  { %766 = vmatprep.subr.bf16.mxu0 %v824_v41 }
  0xc5   :  { %749 = vmatpush3.bf16.msra.mxu1 %v817_v15 }
  0xc6   :  { %767 = vmatpush3.bf16.msra.mxu0 %v824_v41  ;;  %774 = vmatprep.subr.bf16.mxu1 %v826_v43 }
  0xc7   :  { %768 = vmatprep.subr.bf16.mxu0 %v825_v42 }
  0xca   :  { %769 = vmatpush3.bf16.msra.mxu0 %v825_v42 }
 0x180   :  { %v732_v22 = vpop.f32.mrb[0].mxu0 }
 0x181   :  { %v227_v23 = vadd.f32 %v732_v22, %v660_v21  ;;  %v218_v24 = vpop.f32.mrb[1].mxu0 }
 0x182   :  { %v219_v25 = vadd.f32 %v660_v21, %v218_v24  ;;  %v733_v26 = vpop.f32.mrb[2].mxu0 }
 0x183   :  { %v239_v27 = vmul.f32 0.2, %v227_v23  ;;  %v230_v28 = vadd.f32 %v733_v26, %v660_v21  ;;  %v221_v29 = vpop.f32.mrb[3].mxu0  ;;  %vm235_vm1 = vcmp.gt.f32.partialorder %v227_v23, 0.0 }
 0x184   :  { %v237_v30 = vmul.f32 0.2, %v219_v25  ;;  %v222_v31 = vadd.f32 %v660_v21, %v221_v29  ;;  %vm233_vm3 = vcmp.gt.f32.partialorder %v219_v25, 0.0 }
 0x185   :  { %vm236_vm2 = vcmp.gt.f32.partialorder %v230_v28, 0.0  ;;  %v240_v32 = vmul.f32 0.2, %v230_v28  ;;  %v243_v34 = vsel %vm235_vm1, %v227_v23, %v239_v27 }
 0x186   :  { %v238_v33 = vmul.f32 0.2, %v222_v31  ;;  %vm234_vm4 = vcmp.gt.f32.partialorder %v222_v31, 0.0  ;;  %v241_v36 = vsel %vm233_vm3, %v219_v25, %v237_v30  ;;  %v683_v25 = vld [vmem:[#allocation16] ss:$0 sm:$0xff] }
 0x187   :  { %v244_v35 = vsel %vm236_vm2, %v230_v28, %v240_v32 }
 0x188   :  { %v242_v37 = vsel %vm234_vm4, %v222_v31, %v238_v33  ;;  %v246_v38 = vpack.c.bf16 %v244_v35, %v243_v34 }
 0x189   :  { %v245_v39 = vpack.c.bf16 %v242_v37, %v241_v36 }
 0x18b   :  { %750 = vmatprep.mubr.bf16.mxu1 %v245_v39 }
 0x18c   :  { %751 = vmatmul.mubr.bf16.vlgmr.msra.gmra.mrb[0].mxu1 %v246_v38 }
 0x18d   :  { %775 = vmatpush3.bf16.msra.mxu1 %v826_v43 }
 0x18e   :  { %776 = vmatprep.subr.bf16.mxu1 %v827_v44 }
 0x191   :  { %777 = vmatpush3.bf16.msra.mxu1 %v827_v44 }
 0x192   :  { %778 = vmatprep.subr.bf16.mxu1 %v828_v45 }
 0x195   :  { %779 = vmatpush3.bf16.msra.mxu1 %v828_v45 }
 0x196   :  { %780 = vmatprep.subr.bf16.mxu1 %v829_v46 }
 0x199   :  { %781 = vmatpush3.bf16.msra.mxu1 %v829_v46 }
 0x19a   :  { %782 = vmatprep.subr.bf16.mxu1 %v830_v47 }
 0x19d   :  { %783 = vmatpush3.bf16.msra.mxu1 %v830_v47 }
 0x19e   :  { %784 = vmatprep.subr.bf16.mxu1 %v831_v3 }
 0x1a1   :  { %785 = vmatpush3.bf16.msra.mxu1 %v831_v3 }
 0x1a2   :  { %786 = vmatprep.subr.bf16.mxu1 %v832_v4 }
 0x1a5   :  { %787 = vmatpush3.bf16.msra.mxu1 %v832_v4 }
 0x1a6   :  { %788 = vmatprep.subr.bf16.mxu1 %v833_v5 }
 0x1a9   :  { %789 = vmatpush3.bf16.msra.mxu1 %v833_v5 }
 0x25f   :  { %v752_v49 = vpop.f32.mrb[0].mxu1 }
 0x260   :  { %v361_v50 = vadd.f32 %v752_v49, %v665_v48  ;;  %v352_v51 = vpop.f32.mrb[1].mxu1 }
 0x261   :  { %v353_v52 = vadd.f32 %v665_v48, %v352_v51  ;;  %v753_v53 = vpop.f32.mrb[2].mxu1 }
 0x262   :  { %v373_v54 = vmul.f32 0.2, %v361_v50  ;;  %v364_v55 = vadd.f32 %v753_v53, %v665_v48  ;;  %v355_v56 = vpop.f32.mrb[3].mxu1  ;;  %vm369_vm5 = vcmp.gt.f32.partialorder %v361_v50, 0.0 }
 0x263   :  { %v371_v57 = vmul.f32 0.2, %v353_v52  ;;  %v356_v58 = vadd.f32 %v665_v48, %v355_v56  ;;  %vm367_vm6 = vcmp.gt.f32.partialorder %v353_v52, 0.0 }
 0x264   :  { %vm370_vm7 = vcmp.gt.f32.partialorder %v364_v55, 0.0  ;;  %v374_v59 = vmul.f32 0.2, %v364_v55  ;;  %v377_v61 = vsel %vm369_vm5, %v361_v50, %v373_v54 }
 0x265   :  { %vm368_vm8 = vcmp.gt.f32.partialorder %v356_v58, 0.0  ;;  %v372_v60 = vmul.f32 0.2, %v356_v58  ;;  %v375_v0 = vsel %vm367_vm6, %v353_v52, %v371_v57 }
 0x266   :  { %v378_v62 = vsel %vm370_vm7, %v364_v55, %v374_v59 }
 0x267   :  { %v380_v63 = vpack.c.bf16 %v378_v62, %v377_v61  ;;  %v376_v1 = vsel %vm368_vm8, %v356_v58, %v372_v60 }
 0x268   :  { %v379_v2 = vpack.c.bf16 %v376_v1, %v375_v0 }
 0x26a   :  { %770 = vmatprep.mubr.bf16.mxu0 %v379_v2 }
 0x26b   :  { %771 = vmatmul.mubr.bf16.vlgmr.msra.gmra.mrb[4].mxu0 %v380_v63 }
 0x33e   :  { %v772_v7 = vpop.f32.mrb[4].mxu0 }
 0x33f   :  { %v495_v8 = vadd.f32 %v772_v7, %v674_v6  ;;  %v486_v9 = vpop.f32.mrb[5].mxu0 }
 0x340   :  { %v487_v10 = vadd.f32 %v674_v6, %v486_v9  ;;  %v773_v11 = vpop.f32.mrb[6].mxu0 }
 0x341   :  { %v507_v12 = vmul.f32 0.2, %v495_v8  ;;  %v498_v13 = vadd.f32 %v773_v11, %v674_v6  ;;  %v489_v14 = vpop.f32.mrb[7].mxu0  ;;  %vm503_vm9 = vcmp.gt.f32.partialorder %v495_v8, 0.0 }
 0x342   :  { %v505_v15 = vmul.f32 0.2, %v487_v10  ;;  %v490_v16 = vadd.f32 %v674_v6, %v489_v14  ;;  %vm501_vm10 = vcmp.gt.f32.partialorder %v487_v10, 0.0 }
 0x343   :  { %vm504_vm11 = vcmp.gt.f32.partialorder %v498_v13, 0.0  ;;  %v508_v17 = vmul.f32 0.2, %v498_v13  ;;  %v511_v19 = vsel %vm503_vm9, %v495_v8, %v507_v12 }
 0x344   :  { %vm502_vm12 = vcmp.gt.f32.partialorder %v490_v16, 0.0  ;;  %v506_v18 = vmul.f32 0.2, %v490_v16  ;;  %v509_v22 = vsel %vm501_vm10, %v487_v10, %v505_v15 }
 0x345   :  { %v512_v20 = vsel %vm504_vm11, %v498_v13, %v508_v17 }
 0x346   :  { %v514_v21 = vpack.c.bf16 %v512_v20, %v511_v19  ;;  %v510_v23 = vsel %vm502_vm12, %v490_v16, %v506_v18 }
 0x347   :  { %v513_v24 = vpack.c.bf16 %v510_v23, %v509_v22 }
 0x349   :  { %790 = vmatprep.mubr.bf16.mxu1 %v513_v24 }
 0x34a   :  { %791 = vmatmul.mubr.bf16.vlgmr.msra.gmra.mrb[4].mxu1 %v514_v21 }
 0x41d   :  { %v792_v26 = vpop.f32.mrb[4].mxu1 }
 0x41e   :  { %v629_v27 = vadd.f32 %v792_v26, %v683_v25  ;;  %v620_v28 = vpop.f32.mrb[5].mxu1 }
 0x41f   :  { %v621_v29 = vadd.f32 %v683_v25, %v620_v28  ;;  %v793_v30 = vpop.f32.mrb[6].mxu1 }
 0x420   :  { %637 = vst [vmem:[#allocation17 + $0x10] sm:$0xff] %v629_v27  ;;  %v632_v31 = vadd.f32 %v793_v30, %v683_v25  ;;  %v623_v32 = vpop.f32.mrb[7].mxu1 }
 0x421   :  { %635 = vst [vmem:[#allocation17] sm:$0xff] %v621_v29  ;;  %v624_v33 = vadd.f32 %v683_v25, %v623_v32 }
 0x422   :  { %638 = vst [vmem:[#allocation17 + $0x18] sm:$0xff] %v632_v31 }
 0x423   :  { %636 = vst [vmem:[#allocation17 + $0x8] sm:$0xff] %v624_v33 }
 0x424   :  { %1043 = shalt.err (!%p1040_p6)
}
 0x425   :  { %s1044_s1 = scalar_lea.hbm %s1277_s9, 512 }
 0x426   :  { %p1045_p7 = scmp.ne.s32.totalorder %s1277_s9, %s1044_s1  ;;  %p1048_p8 = scmp.lt.u32.totalorder %s1044_s1, %s1277_s9 }
 0x428   :  { %p1050_p9 = pnand %p1048_p8, %p1045_p7 }
 0x42a   :  { %1053 = shalt.err (!%p1050_p9)
}
 0x42b   :  { %650 = dma.vmem_to_hbm [thread:$0]  %s645_s28, 512, %s1277_s9, [#allocation4], %s1073_s7, %s1073_s7, %s1074_s19  }
 0x42c   :  { %1064 = dma.done.wait [#allocation4], 512  }
 0x42d   :  { %1065 = vsyncadd [#allocation4], 4294966784 }
 0x42e   :  { %654 = vsyncpa [#allocation3], 1 }
 0x42f   :  { %655 = vsyncpa [#allocation6], 1 }
 0x430   :  { %656 = vsyncpa [#allocation9], 1 }
 0x431   :  { %657 = vsyncpa [#allocation12], 1 }
 0x432   :  { %658 = vsyncpa [#allocation15], 1 }
 0x433   :  { %659 = vsyncpa [#allocation4], 1 }

</bundles_post_ra>
